<compile_context>
chip_gen: v7x
topology: tpu7x:2x2x1
jax: 0.10.0
libtpu: 0.0.40
codegen_flags: <defaults>
</compile_context>

<pallas_src>
import jax
import jax.numpy as jnp
from jax import lax
from jax.experimental import pallas as pl
from jax.experimental.pallas import tpu as pltpu


def _make_normalize_kernel(power):
    # Integer exponent? (PyTorch x.pow(2) etc.) -> stay on the VALU.
    p_int = int(power) if float(power) == int(power) else None

    def normalize_kernel(x_ref, o_ref):
        # x_ref: (TB, C, TILE_HW) tile: TB batch elems, full channel axis,
        # lane-dense spatial slice.
        xn = x_ref[...]                          # native dtype
        x32 = xn.astype(jnp.float32)

        if p_int is not None:
            xp = lax.integer_pow(x32, p_int)     # VALU multiply chain, no exp/log
        else:
            xp = jnp.power(x32, power)           # non-integer p fallback

        s = jnp.sum(xp, axis=1, keepdims=True)   # (TB, 1, TILE_HW) channel reduce

        if p_int == 2:
            inv = lax.rsqrt(s)                   # EUP: 1/sqrt(s) in one op
        elif p_int == 1:
            inv = pl.reciprocal(s)               # norm == s
        else:
            inv = pl.reciprocal(jnp.power(s, 1.0 / power))

        # Reciprocal-multiply instead of TB x C x TILE_HW divides.
        if o_ref.dtype == jnp.float32:
            o_ref[...] = (x32 * inv).astype(o_ref.dtype)
        else:
            # bf16 path: scale on the native-dtype tile so the f32 copy is not
            # kept live across the store (halves vreg/VMEM footprint).
            o_ref[...] = (xn * inv.astype(xn.dtype)).astype(o_ref.dtype)

    return normalize_kernel


def _vmem_limit_bytes():
    """Generation-aware scoped-VMEM limit with ~25% headroom."""
    try:
        phys = pltpu.get_tpu_info().vmem_capacity_bytes
    except Exception:
        phys = 64 << 20  # conservative (v7x-sized) fallback
    # v7x (64 MiB)  -> 48 MiB limit; v5e/v6e (128 MiB) -> 96 MiB limit.
    return int(min(max(32 << 20, phys * 3 // 4), 96 << 20))


def _pick_tiles(B, C, HW_pad, itemsize, vmem_limit):
    """Pick (TB, TILE_HW) so each grid step moves MiB-scale, lane-dense blocks.

    Per-step VMEM is roughly (2 in + 2 out) double-buffers in native dtype plus
    f32 intermediates, i.e. ~6-8x the input-block bytes, so budget the input
    block at ~1/8 of the VMEM limit (capped at 8 MiB -- already far above the
    ~1 MiB that per-step overhead costs even on v7x HBM).
    """
    budget = min(8 << 20, vmem_limit // 8)

    # Largest multiple of 128 that evenly divides HW_pad and fits the budget.
    max_hw = max(128, (budget // (C * itemsize) // 128) * 128)
    tile_hw = min(HW_pad, max_hw)
    while HW_pad % tile_hw != 0:
        tile_hw -= 128  # terminates at 128 since HW_pad % 128 == 0

    # Fold batch elements per step when a single image's slice is small
    # (amortizes ~0.35 us/step overhead); target >= ~2 MiB per step.
    per_img = C * tile_hw * itemsize
    target = 2 << 20
    tb = 1
    for cand in range(1, B + 1):
        if B % cand:
            continue
        if cand * per_img > budget:
            break
        tb = cand
        if cand * per_img >= target:
            break
    return tb, tile_hw


def normalize(x, power=2):
    """L_p-normalize `x` over axis 1 (channels). x: (B, C, H, W) NCHW."""
    B, C, H, W = x.shape
    HW = H * W
    x2 = x.reshape(B, C, HW)

    # Pad HW to a multiple of 128: lane-dense, unmasked stores on every tile.
    HW_pad = pl.cdiv(HW, 128) * 128
    if HW_pad != HW:
        # Pad value is irrelevant (each column is normalized independently and
        # padded columns are sliced off); use 1.0 so no inf/NaN is produced.
        x2 = jnp.pad(x2, ((0, 0), (0, 0), (0, HW_pad - HW)), constant_values=1)

    itemsize = x.dtype.itemsize
    vmem_limit = _vmem_limit_bytes()
    tb, tile_hw = _pick_tiles(B, C, HW_pad, itemsize, vmem_limit)
    grid = (B // tb, HW_pad // tile_hw)

    cost = pl.CostEstimate(
        flops=3 * B * C * HW_pad,
        transcendentals=B * HW_pad,
        bytes_accessed=2 * B * C * HW_pad * itemsize,
    )

    out = pl.pallas_call(
        _make_normalize_kernel(power),
        out_shape=jax.ShapeDtypeStruct((B, C, HW_pad), x.dtype),
        grid_spec=pltpu.PrefetchScalarGridSpec(
            num_scalar_prefetch=0,
            grid=grid,
            in_specs=[
                pl.BlockSpec((tb, C, tile_hw), lambda b, s: (b, 0, s)),
            ],
            out_specs=pl.BlockSpec((tb, C, tile_hw), lambda b, s: (b, 0, s)),
        ),
        compiler_params=pltpu.CompilerParams(
            dimension_semantics=("parallel", "parallel"),
            vmem_limit_bytes=vmem_limit,
        ),
        cost_estimate=cost,
    )(x2)

    if HW_pad != HW:
        out = out[:, :, :HW]
    return out.reshape(B, C, H, W)


def normalize_ref(x, power=2):
    """Pure-JAX reference matching the PyTorch module exactly."""
    norm = jnp.power(jnp.sum(jnp.power(x, power), axis=1, keepdims=True), 1.0 / power)
    return x / norm


if __name__ == "__main__":
    key = jax.random.PRNGKey(0)
    # Small shape consistent with an NCHW activation: batch=2, channels=4, 16x16 spatial.
    x = jax.random.normal(key, (2, 4, 16, 16), dtype=jnp.float32)

    out = normalize(x, power=2)
    out = jax.block_until_ready(out)

    ref = normalize_ref(x, power=2)
    assert out.shape == ref.shape and out.dtype == ref.dtype
    assert jnp.allclose(out, ref, atol=1e-5, rtol=1e-5), "mismatch vs reference"

    print("KERNEL_OK")
</pallas_src>

<mosaic_0001>
module attributes {stable_mosaic.version = 11 : i64} {
  func.func @normalize_kernel(%arg0: i32, %arg1: i32, %arg2: memref<2x4x256xf32, #tpu.memory_space<vmem>>, %arg3: memref<2x4x256xf32, #tpu.memory_space<vmem>>) attributes {dimension_semantics = [#tpu.dimension_semantics<parallel>, #tpu.dimension_semantics<parallel>], iteration_bounds = array<i64: 1, 1>, scalar_prefetch = 0 : i64, scratch_operands = 0 : i64, tpu.core_type = #tpu.core_type<tc>, window_params = [{transform_indices = @transform_0, window_bounds = array<i64: 2, 4, 256>}, {transform_indices = @transform_1, window_bounds = array<i64: 2, 4, 256>}]} {
    %c0 = arith.constant 0 : index
    %c0_0 = arith.constant 0 : index
    %c0_1 = arith.constant 0 : index
    %0 = vector.load %arg2[%c0, %c0_0, %c0_1] : memref<2x4x256xf32, #tpu.memory_space<vmem>>, vector<2x4x256xf32>
    %1 = arith.mulf %0, %0 : vector<2x4x256xf32>
    %cst = arith.constant dense<0.000000e+00> : vector<2x256xf32>
    %2 = vector.multi_reduction <add>, %1, %cst [1] : vector<2x4x256xf32> to vector<2x256xf32>
    %3 = vector.shape_cast %2 : vector<2x256xf32> to vector<2x1x256xf32>
    %4 = math.rsqrt %3 : vector<2x1x256xf32>
    %5 = vector.broadcast %4 : vector<2x1x256xf32> to vector<2x4x256xf32>
    %6 = arith.mulf %0, %5 : vector<2x4x256xf32>
    %c0_2 = arith.constant 0 : index
    %c0_3 = arith.constant 0 : index
    %c0_4 = arith.constant 0 : index
    %7 = vector.load %arg3[%c0_2, %c0_3, %c0_4] : memref<2x4x256xf32, #tpu.memory_space<vmem>>, vector<2x4x256xf32>
    tpu.vector_store %arg3[%c0_2, %c0_3, %c0_4], %6 {strides = array<i32>} : memref<2x4x256xf32, #tpu.memory_space<vmem>>, vector<2x4x256xf32>,
    return
  }
  func.func @transform_0(%arg0: i32, %arg1: i32) -> (i32, i32, i32) {
    %c0_i32 = arith.constant 0 : i32
    %c0_i32_0 = arith.constant 0 : i32
    return %arg0, %c0_i32, %arg1 : i32, i32, i32
  }
  func.func @transform_1(%arg0: i32, %arg1: i32) -> (i32, i32, i32) {
    %c0_i32 = arith.constant 0 : i32
    %c0_i32_0 = arith.constant 0 : i32
    return %arg0, %c0_i32, %arg1 : i32, i32, i32
  }
}

</mosaic_0001>

<bundles_post_ra>
// kernel: tpu_custom_call.1
= control target key start
LH: loop header
LB: loop body
LE: loop exit
PB: predicated region body
PF: predicated region fallthrough
CT: control target
= control target key end

     0   :  { %6 = vsyncpa [#allocation3], 0  ;;  %s199_s0 = inlined_call_operand.hbm [shape: f32[2,4,256], index: 0, kind: input, shape index: {}]   ;;  %s200_s1 = inlined_call_operand.hbm [shape: f32[2,4,256], index: 1, kind: output, shape index: {}]  }
   0x1   :  { %7 = vsyncpa [#allocation4], 0  ;;  %s155_s6 = smov [#allocation2]   ;;  %s107_s10 = scalar_lea.hbm %s199_s0, 256 }
   0x2   :  { %s13_s7 = sshll.u32 %s155_s6, 4  ;;  %p108_p0 = scmp.ne.s32.totalorder %s199_s0, %s107_s10  ;;  %s14_s7 = int_to_ptr.vmem [resolvable:$true] %s13_s7 }
   0x3   :  { %p111_p1 = scmp.lt.u32.totalorder %s107_s10, %s199_s0 }
   0x5   :  { %p113_p2 = pnand %p111_p1, %p108_p0 }
   0x7   :  { %116 = shalt.err (!%p113_p2)
}
   0x8   :  { %s117_s15 = scalar_lea.vmem %s14_s7, 256  ;;  %p122_p4 = scmp.lt.s32.totalorder %s14_s7, %s14_s7 }
   0x9   :  { %p118_p3 = scmp.ne.s32.totalorder %s14_s7, %s117_s15  ;;  %p123_p5 = scmp.lt.s32.totalorder %s117_s15, %s117_s15 }
   0xb   :  { %p124_p6 = por %p123_p5, %p122_p4 }
   0xd   :  { %p125_p7 = pnand %p124_p6, %p118_p3 }
   0xf   :  { %128 = shalt.err (!%p125_p7)
}
  0x10   :  { %s156_s16 = smov 128   ;;  %s157_s17 = smov 8  }
  0x11   :  { %19 = dma.hbm_to_vmem [thread:$0]  %s199_s0, 256, %s14_s7, [#allocation3], %s156_s16, %s156_s16, %s157_s17  }
  0x12   :  { %151 = dma.done.wait [#allocation3], 256  }
  0x13   :  { %152 = vsyncadd [#allocation3], 4294967040  ;;  %v23_v0 = vld [vmem:[#allocation2] sm:$0xff]  ;;  %vm33_vm0 = vcmask 1043456   ;;  %v24_v1 = vld [vmem:[#allocation2 + $0x8] sm:$0xff]  ;;  %s158_s0 = smov [#allocation5]  }
  0x14   :  { %v25_v2 = vmul.f32 %v23_v0, %v23_v0  ;;  %v26_v3 = vmul.f32 %v24_v1, %v24_v1  ;;  %s83_s20 = sshll.u32 %s158_s0, 4  ;;  %s84_s20 = int_to_ptr.vmem [resolvable:$true] %s83_s20 }
  0x15   :  { %s129_s21 = scalar_lea.vmem %s84_s20, 256  ;;  %p134_p9 = scmp.lt.s32.totalorder %s84_s20, %s84_s20 }
  0x16   :  { %v29_v4 = vcombine.high %v25_v2, %v25_v2  ;;  %v34_v5 = vsel %vm33_vm0, %v25_v2, 0.0  ;;  %v30_v6 = vcombine.high %v26_v3, %v26_v3  ;;  %v48_v7 = vsel %vm33_vm0, %v26_v3, 0.0  ;;  %p130_p8 = scmp.ne.s32.totalorder %s84_s20, %s129_s21  ;;  %p135_p10 = scmp.lt.s32.totalorder %s129_s21, %s129_s21 }
  0x17   :  { %v35_v8 = vrot.slane %v34_v5, 4  ;;  %v49_v9 = vrot.slane %v48_v7, 4 }
  0x18   :  { %v41_v10 = vsel %vm33_vm0, %v29_v4, 0.0  ;;  %v55_v11 = vsel %vm33_vm0, %v30_v6, 0.0  ;;  %p136_p11 = por %p135_p10, %p134_p9 }
  0x19   :  { %v36_v12 = vadd.f32 %v35_v8, %v34_v5  ;;  %v42_v13 = vrot.slane %v41_v10, 4  ;;  %v50_v14 = vadd.f32 %v49_v9, %v48_v7  ;;  %v56_v15 = vrot.slane %v55_v11, 4 }
  0x1a   :  { %p137_p12 = pnand %p136_p11, %p130_p8 }
  0x1b   :  { %v37_v16 = vrot.slane %v36_v12, 2  ;;  %v43_v17 = vadd.f32 %v42_v13, %v41_v10  ;;  %v51_v18 = vrot.slane %v50_v14, 2  ;;  %v57_v19 = vadd.f32 %v56_v15, %v55_v11 }
  0x1d   :  { %v38_v20 = vadd.f32 %v37_v16, %v36_v12  ;;  %v44_v21 = vrot.slane %v43_v17, 2  ;;  %v52_v22 = vadd.f32 %v51_v18, %v50_v14  ;;  %v58_v23 = vrot.slane %v57_v19, 2 }
  0x1f   :  { %v39_v24 = vrot.slane %v38_v20, 1  ;;  %v45_v25 = vadd.f32 %v44_v21, %v43_v17  ;;  %v53_v26 = vrot.slane %v52_v22, 1  ;;  %v59_v27 = vadd.f32 %v58_v23, %v57_v19 }
  0x21   :  { %v40_v28 = vadd.f32 %v39_v24, %v38_v20  ;;  %v46_v29 = vrot.slane %v45_v25, 1  ;;  %v54_v30 = vadd.f32 %v53_v26, %v52_v22  ;;  %v60_v31 = vrot.slane %v59_v27, 1 }
  0x23   :  { %v47_v32 = vadd.f32 %v46_v29, %v45_v25  ;;  %99 = vrsqrt.f32 %v40_v28  ;;  %v61_v33 = vadd.f32 %v60_v31, %v59_v27 }
  0x24   :  { %101 = vrsqrt.f32 %v54_v30 }
  0x25   :  { %103 = vrsqrt.f32 %v47_v32 }
  0x26   :  { %105 = vrsqrt.f32 %v61_v33 }
  0x2d   :  { %v100_v34 = vpop.eup %99 }
  0x2e   :  { %v102_v35 = vpop.eup %101 }
  0x2f   :  { %v104_v36 = vpop.eup %103 }
  0x30   :  { %v106_v37 = vpop.eup %105  ;;  %v70_v38 = vcombine.low %v100_v34, %v104_v36 }
  0x31   :  { %v71_v39 = vcombine.low %v102_v35, %v106_v37 }
  0x32   :  { %v74_v40 = vmul.f32 %v70_v38, %v23_v0 }
  0x33   :  { %v75_v41 = vmul.f32 %v71_v39, %v24_v1 }
  0x34   :  { %76 = vst [vmem:[#allocation5] sm:$0xff] %v74_v40 }
  0x35   :  { %77 = vst [vmem:[#allocation5 + $0x8] sm:$0xff] %v75_v41 }
  0x36   :  { %140 = shalt.err (!%p137_p12)
}
  0x37   :  { %s141_s24 = scalar_lea.hbm %s200_s1, 256 }
  0x38   :  { %p142_p13 = scmp.ne.s32.totalorder %s200_s1, %s141_s24  ;;  %p145_p0 = scmp.lt.u32.totalorder %s141_s24, %s200_s1 }
  0x3a   :  { %p147_p1 = pnand %p145_p0, %p142_p13 }
  0x3c   :  { %150 = shalt.err (!%p147_p1)
}
  0x3d   :  { %89 = dma.vmem_to_hbm [thread:$0]  %s84_s20, 256, %s200_s1, [#allocation4], %s156_s16, %s156_s16, %s157_s17  }
  0x3e   :  { %153 = dma.done.wait [#allocation4], 256  }
  0x3f   :  { %154 = vsyncadd [#allocation4], 4294967040 }
  0x40   :  { %93 = vsyncpa [#allocation3], 1 }
  0x41   :  { %94 = vsyncpa [#allocation4], 1 }

</bundles_post_ra>
